<compile_context>
chip_gen: v7x
topology: tpu7x:2x2x1
jax: 0.10.0
libtpu: 0.0.40
codegen_flags: <defaults>
</compile_context>

<pallas_src>
import jax
import jax.numpy as jnp
from jax.experimental import pallas as pl
from jax.experimental.pallas import tpu as pltpu


def _mlp_kernel(x_ref, w1_ref, b1_ref, w2_ref, b2_ref, o_ref):
    # x_ref:  (TB, 896)    VMEM
    # w1_ref: (896, 128)   b1_ref: (1, 128)
    # w2_ref: (128, 128)   b2_ref: (1, 128)   (zero-padded cols 10..127)
    # o_ref:  (TB, 128)
    x = x_ref[...]

    # fc1 + ReLU (MXU matmul, f32 accumulate)
    h = jnp.dot(x, w1_ref[...], preferred_element_type=jnp.float32)
    h = jnp.maximum(h + b1_ref[...], 0.0)

    # fc2 (lane-dense 128-wide output; extra columns are exactly zero)
    y = jnp.dot(h, w2_ref[...], preferred_element_type=jnp.float32)
    y = y + b2_ref[...]

    o_ref[...] = y.astype(o_ref.dtype)


def mlp_forward(x_nchw, w1, b1, w2, b2, *, tb_max=256):
    """Forward pass of Net. x_nchw: (B, 1, 28, 28) float32 -> (B, 10)."""
    B = x_nchw.shape[0]
    # nn.Flatten(): (B, 1, 28, 28) -> (B, 784)   (glue, plain JAX)
    x = x_nchw.reshape(B, -1).astype(jnp.float32)

    in_dim = x.shape[1]            # 784
    hid = w1.shape[1]              # 128
    out_dim = w2.shape[1]          # 10

    # --- padding for lane-dense layout ---
    in_pad = pl.cdiv(in_dim, 128) * 128          # 784 -> 896
    out_pad = pl.cdiv(out_dim, 128) * 128        # 10  -> 128

    # --- batch tiling (TB multiple of 8, fills MXU rows at large B) ---
    if B >= tb_max:
        TB = tb_max
    else:
        TB = max(8, ((B + 7) // 8) * 8)
    B_pad = pl.cdiv(B, TB) * TB

    # Zero-pad operands (wrapper-side glue; padded regions contribute 0).
    x_p = jnp.zeros((B_pad, in_pad), jnp.float32).at[:B, :in_dim].set(x)
    w1_p = jnp.zeros((in_pad, hid), jnp.float32).at[:in_dim, :].set(
        w1.astype(jnp.float32))
    b1_p = b1.reshape(1, hid).astype(jnp.float32)
    w2_p = jnp.zeros((hid, out_pad), jnp.float32).at[:, :out_dim].set(
        w2.astype(jnp.float32))
    b2_p = jnp.zeros((1, out_pad), jnp.float32).at[:, :out_dim].set(
        b2.reshape(1, out_dim).astype(jnp.float32))

    grid = (B_pad // TB,)

    flops = 2 * B_pad * in_pad * hid + 2 * B_pad * hid * out_pad
    bytes_accessed = 4 * (B_pad * in_pad + in_pad * hid + hid
                          + hid * out_pad + out_pad + B_pad * out_pad)
    cost = pl.CostEstimate(flops=flops, transcendentals=0,
                           bytes_accessed=bytes_accessed)

    out = pl.pallas_call(
        _mlp_kernel,
        out_shape=jax.ShapeDtypeStruct((B_pad, out_pad), jnp.float32),
        grid_spec=pltpu.PrefetchScalarGridSpec(
            num_scalar_prefetch=0,
            grid=grid,
            in_specs=[
                # x: tiled over batch
                pl.BlockSpec((TB, in_pad), lambda i: (i, 0)),
                # weights / biases: resident (constant block index -> DMA
                # only on the first grid step)
                pl.BlockSpec((in_pad, hid), lambda i: (0, 0)),
                pl.BlockSpec((1, hid), lambda i: (0, 0)),
                pl.BlockSpec((hid, out_pad), lambda i: (0, 0)),
                pl.BlockSpec((1, out_pad), lambda i: (0, 0)),
            ],
            out_specs=pl.BlockSpec((TB, out_pad), lambda i: (i, 0)),
        ),
        compiler_params=pltpu.CompilerParams(
            dimension_semantics=("parallel",)),
        cost_estimate=cost,
    )(x_p, w1_p, b1_p, w2_p, b2_p)

    # Strip batch and lane padding.
    return out[:B, :out_dim]


def init_params(key):
    """Deterministic parameter init matching nn.Linear's fan-in uniform."""
    k1, k2, k3, k4 = jax.random.split(key, 4)
    in_dim, hid, out_dim = 28 * 28, 128, 10
    bound1 = 1.0 / jnp.sqrt(in_dim)
    bound2 = 1.0 / jnp.sqrt(hid)
    # Stored as (in, out) — transposed relative to PyTorch's (out, in).
    w1 = jax.random.uniform(k1, (in_dim, hid), jnp.float32, -bound1, bound1)
    b1 = jax.random.uniform(k2, (1, hid), jnp.float32, -bound1, bound1)
    w2 = jax.random.uniform(k3, (hid, out_dim), jnp.float32, -bound2, bound2)
    b2 = jax.random.uniform(k4, (1, out_dim), jnp.float32, -bound2, bound2)
    return w1, b1, w2, b2


if __name__ == "__main__":
    key = jax.random.PRNGKey(0)
    kx, kp = jax.random.split(key)

    # Small batch of MNIST-shaped inputs (NCHW).
    B = 8
    x = jax.random.normal(kx, (B, 1, 28, 28), dtype=jnp.float32)
    w1, b1, w2, b2 = init_params(kp)

    out = mlp_forward(x, w1, b1, w2, b2)
    out = jax.block_until_ready(out)

    # Reference check in plain JAX (same math, f32 throughout).
    ref = jnp.maximum(x.reshape(B, -1) @ w1 + b1, 0.0) @ w2 + b2
    assert out.shape == (B, 10)
    assert jnp.allclose(out, ref, atol=1e-4, rtol=1e-4)

    print("KERNEL_OK")
</pallas_src>

<mosaic_0001>
module attributes {stable_mosaic.version = 11 : i64} {
  func.func @_mlp_kernel(%arg0: i32, %arg1: memref<8x896xf32, #tpu.memory_space<vmem>>, %arg2: memref<896x128xf32, #tpu.memory_space<vmem>>, %arg3: memref<1x128xf32, #tpu.memory_space<vmem>>, %arg4: memref<128x128xf32, #tpu.memory_space<vmem>>, %arg5: memref<1x128xf32, #tpu.memory_space<vmem>>, %arg6: memref<8x128xf32, #tpu.memory_space<vmem>>) attributes {dimension_semantics = [#tpu.dimension_semantics<parallel>], iteration_bounds = array<i64: 1>, scalar_prefetch = 0 : i64, scratch_operands = 0 : i64, tpu.core_type = #tpu.core_type<tc>, window_params = [{transform_indices = @transform_0, window_bounds = array<i64: 8, 896>}, {pipeline_mode = #tpu.pipeline_mode<synchronous>, transform_indices = @transform_1, window_bounds = array<i64: 896, 128>}, {pipeline_mode = #tpu.pipeline_mode<synchronous>, transform_indices = @transform_2, window_bounds = array<i64: 1, 128>}, {pipeline_mode = #tpu.pipeline_mode<synchronous>, transform_indices = @transform_3, window_bounds = array<i64: 128, 128>}, {pipeline_mode = #tpu.pipeline_mode<synchronous>, transform_indices = @transform_4, window_bounds = array<i64: 1, 128>}, {transform_indices = @transform_5, window_bounds = array<i64: 8, 128>}]} {
    %c0 = arith.constant 0 : index
    %c0_0 = arith.constant 0 : index
    %0 = vector.load %arg1[%c0, %c0_0] : memref<8x896xf32, #tpu.memory_space<vmem>>, vector<8x896xf32>
    %c0_1 = arith.constant 0 : index
    %c0_2 = arith.constant 0 : index
    %1 = vector.load %arg2[%c0_1, %c0_2] : memref<896x128xf32, #tpu.memory_space<vmem>>, vector<896x128xf32>
    %cst = arith.constant dense<0.000000e+00> : vector<8x128xf32>
    %2 = tpu.matmul %0, %1, %cst {dimension_numbers = #tpu.dot_dimension_numbers<[1], [0], [0], [1], [0, 0, 1, 1], [], []>} : vector<8x896xf32>, vector<896x128xf32>, vector<8x128xf32> -> vector<8x128xf32>
    %c0_3 = arith.constant 0 : index
    %c0_4 = arith.constant 0 : index
    %3 = vector.load %arg3[%c0_3, %c0_4] : memref<1x128xf32, #tpu.memory_space<vmem>>, vector<1x128xf32>
    %4 = vector.broadcast %3 : vector<1x128xf32> to vector<8x128xf32>
    %5 = arith.addf %2, %4 : vector<8x128xf32>
    %cst_5 = arith.constant 0.000000e+00 : f32
    %6 = vector.broadcast %cst_5 : f32 to vector<8x128xf32>
    %7 = arith.maximumf %5, %6 : vector<8x128xf32>
    %c0_6 = arith.constant 0 : index
    %c0_7 = arith.constant 0 : index
    %8 = vector.load %arg4[%c0_6, %c0_7] : memref<128x128xf32, #tpu.memory_space<vmem>>, vector<128x128xf32>
    %cst_8 = arith.constant dense<0.000000e+00> : vector<8x128xf32>
    %9 = tpu.matmul %7, %8, %cst_8 {dimension_numbers = #tpu.dot_dimension_numbers<[1], [0], [0], [1], [0, 0, 1, 1], [], []>} : vector<8x128xf32>, vector<128x128xf32>, vector<8x128xf32> -> vector<8x128xf32>
    %c0_9 = arith.constant 0 : index
    %c0_10 = arith.constant 0 : index
    %10 = vector.load %arg5[%c0_9, %c0_10] : memref<1x128xf32, #tpu.memory_space<vmem>>, vector<1x128xf32>
    %11 = vector.broadcast %10 : vector<1x128xf32> to vector<8x128xf32>
    %12 = arith.addf %9, %11 : vector<8x128xf32>
    %c0_11 = arith.constant 0 : index
    %c0_12 = arith.constant 0 : index
    %13 = vector.load %arg6[%c0_11, %c0_12] : memref<8x128xf32, #tpu.memory_space<vmem>>, vector<8x128xf32>
    tpu.vector_store %arg6[%c0_11, %c0_12], %12 {strides = array<i32>} : memref<8x128xf32, #tpu.memory_space<vmem>>, vector<8x128xf32>,
    return
  }
  func.func @transform_0(%arg0: i32) -> (i32, i32) {
    %c0_i32 = arith.constant 0 : i32
    %c0_i32_0 = arith.constant 0 : i32
    return %arg0, %c0_i32 : i32, i32
  }
  func.func @transform_1(%arg0: i32) -> (i32, i32) {
    %c0_i32 = arith.constant 0 : i32
    %c0_i32_0 = arith.constant 0 : i32
    %c0_i32_1 = arith.constant 0 : i32
    return %c0_i32, %c0_i32_0 : i32, i32
  }
  func.func @transform_2(%arg0: i32) -> (i32, i32) {
    %c0_i32 = arith.constant 0 : i32
    %c0_i32_0 = arith.constant 0 : i32
    %c0_i32_1 = arith.constant 0 : i32
    return %c0_i32, %c0_i32_0 : i32, i32
  }
  func.func @transform_3(%arg0: i32) -> (i32, i32) {
    %c0_i32 = arith.constant 0 : i32
    %c0_i32_0 = arith.constant 0 : i32
    %c0_i32_1 = arith.constant 0 : i32
    return %c0_i32, %c0_i32_0 : i32, i32
  }
  func.func @transform_4(%arg0: i32) -> (i32, i32) {
    %c0_i32 = arith.constant 0 : i32
    %c0_i32_0 = arith.constant 0 : i32
    %c0_i32_1 = arith.constant 0 : i32
    return %c0_i32, %c0_i32_0 : i32, i32
  }
  func.func @transform_5(%arg0: i32) -> (i32, i32) {
    %c0_i32 = arith.constant 0 : i32
    %c0_i32_0 = arith.constant 0 : i32
    return %arg0, %c0_i32 : i32, i32
  }
}

</mosaic_0001>

<bundles_post_ra>
// kernel: tpu_custom_call.1
= control target key start
LH: loop header
LB: loop body
LE: loop exit
PB: predicated region body
PF: predicated region fallthrough
CT: control target
= control target key end

     0   :  { %10 = vsyncpa [#allocation3], 0  ;;  %s1154_s0 = inlined_call_operand.hbm [shape: f32[8,896], index: 0, kind: input, shape index: {}]   ;;  %s1155_s1 = inlined_call_operand.hbm [shape: f32[896,128], index: 1, kind: input, shape index: {}]   ;;  %s1156_s2 = inlined_call_operand.vmem [shape: f32[1,128], index: 2, kind: input, shape index: {}]   ;;  %s1157_s3 = inlined_call_operand.hbm [shape: f32[128,128], index: 3, kind: input, shape index: {}]   ;;  %s1158_s4 = inlined_call_operand.vmem [shape: f32[1,128], index: 4, kind: input, shape index: {}]   ;;  %s1159_s5 = inlined_call_operand.hbm [shape: f32[8,128], index: 5, kind: output, shape index: {}]  }
   0x1   :  { %11 = vsyncpa [#allocation6], 0 }
   0x2   :  { %12 = vsyncpa [#allocation4], 0  ;;  %s1035_s18 = smov [#allocation5]   ;;  %s941_s22 = scalar_lea.hbm %s1155_s1, 14336 }
   0x3   :  { %s28_s19 = sshll.u32 %s1035_s18, 4  ;;  %p942_p0 = scmp.ne.s32.totalorder %s1155_s1, %s941_s22  ;;  %s29_s19 = int_to_ptr.vmem [resolvable:$true] %s28_s19 }
   0x4   :  { %p945_p1 = scmp.lt.u32.totalorder %s941_s22, %s1155_s1 }
   0x6   :  { %p947_p2 = pnand %p945_p1, %p942_p0 }
   0x8   :  { %950 = shalt.err (!%p947_p2)
}
   0x9   :  { %s951_s27 = scalar_lea.vmem %s29_s19, 14336  ;;  %p956_p4 = scmp.lt.s32.totalorder %s29_s19, %s29_s19 }
   0xa   :  { %p952_p3 = scmp.ne.s32.totalorder %s29_s19, %s951_s27  ;;  %p957_p5 = scmp.lt.s32.totalorder %s951_s27, %s951_s27 }
   0xc   :  { %p958_p6 = por %p957_p5, %p956_p4 }
   0xe   :  { %p959_p7 = pnand %p958_p6, %p952_p3 }
  0x10   :  { %962 = shalt.err (!%p959_p7)
}
  0x11   :  { %s1036_s28 = smov 128   ;;  %s1037_s29 = smov 8  }
  0x12   :  { %34 = dma.hbm_to_vmem [thread:$0]  %s1155_s1, 14336, %s29_s19, [#allocation6], %s1036_s28, %s1036_s28, %s1037_s29  }
  0x13   :  { %s1038_s7 = smov [#allocation2]   ;;  %s1039_s9 = smov [#allocation7]  }
  0x14   :  { %s19_s8 = sshll.u32 %s1038_s7, 4  ;;  %s42_s10 = sshll.u32 %s1039_s9, 4  ;;  %s20_s8 = int_to_ptr.vmem [resolvable:$true] %s19_s8  ;;  %s43_s10 = int_to_ptr.vmem [resolvable:$true] %s42_s10 }
  0x15   :  { %s963_s13 = scalar_lea.hbm %s1154_s0, 896 }
  0x16   :  { %p964_p8 = scmp.ne.s32.totalorder %s1154_s0, %s963_s13  ;;  %p967_p9 = scmp.lt.u32.totalorder %s963_s13, %s1154_s0 }
  0x18   :  { %p969_p10 = pnand %p967_p9, %p964_p8 }
  0x1a   :  { %972 = shalt.err (!%p969_p10)
}
  0x1b   :  { %s973_s1 = scalar_lea.vmem %s20_s8, 896  ;;  %p978_p12 = scmp.lt.s32.totalorder %s20_s8, %s20_s8 }
  0x1c   :  { %p974_p11 = scmp.ne.s32.totalorder %s20_s8, %s973_s1  ;;  %p979_p13 = scmp.lt.s32.totalorder %s973_s1, %s973_s1 }
  0x1e   :  { %p980_p0 = por %p979_p13, %p978_p12 }
  0x20   :  { %p981_p1 = pnand %p980_p0, %p974_p11 }
  0x22   :  { %984 = shalt.err (!%p981_p1)
}
  0x23   :  { %22 = dma.hbm_to_vmem [thread:$0]  %s1154_s0, 896, %s20_s8, [#allocation3]  }
  0x24   :  { %s985_s22 = scalar_lea.hbm %s1157_s3, 2048 }
  0x25   :  { %p986_p2 = scmp.ne.s32.totalorder %s1157_s3, %s985_s22  ;;  %p989_p3 = scmp.lt.u32.totalorder %s985_s22, %s1157_s3 }
  0x27   :  { %p991_p4 = pnand %p989_p3, %p986_p2 }
  0x29   :  { %994 = shalt.err (!%p991_p4)
}
  0x2a   :  { %s995_s27 = scalar_lea.vmem %s43_s10, 2048  ;;  %p1000_p6 = scmp.lt.s32.totalorder %s43_s10, %s43_s10 }
  0x2b   :  { %p996_p5 = scmp.ne.s32.totalorder %s43_s10, %s995_s27  ;;  %p1001_p7 = scmp.lt.s32.totalorder %s995_s27, %s995_s27 }
  0x2d   :  { %p1002_p8 = por %p1001_p7, %p1000_p6 }
  0x2f   :  { %p1003_p9 = pnand %p1002_p8, %p996_p5 }
  0x31   :  { %1006 = shalt.err (!%p1003_p9)
}
  0x32   :  { %48 = dma.hbm_to_vmem [thread:$0]  %s1157_s3, 2048, %s43_s10, [#allocation6], %s1036_s28, %s1036_s28, %s1037_s29  }
  0x33   :  { %1029 = dma.done.wait [#allocation3], 896  }
  0x34   :  { %1030 = vsyncadd [#allocation3], 4294966400 }
  0x35   :  { %1031 = dma.done.wait [#allocation6], 16384  }
  0x36   :  { %1032 = vsyncadd [#allocation6], 4294950912  ;;  %v83_v0 = vld [vmem:[#allocation5 + $0x80] sm:$0xff]  ;;  %v84_v1 = vld [vmem:[#allocation5 + $0x88] sm:$0xff]  ;;  %vm1041_vm0 = vmmov 0  }
  0x37   :  { %v67_v2 = vld [vmem:[#allocation5] sm:$0xff]  ;;  %v788_v3 = vpack.c.bf16 %v84_v1, %v83_v0  ;;  %v68_v4 = vld [vmem:[#allocation5 + $0x8] sm:$0xff]  ;;  %v85_v11 = vld [vmem:[#allocation5 + $0x90] sm:$0xff] }
  0x38   :  { %v115_v5 = vld [vmem:[#allocation5 + $0x180] sm:$0xff]  ;;  %v116_v6 = vld [vmem:[#allocation5 + $0x188] sm:$0xff]  ;;  %v790_v7 = vpack.c.bf16 %v68_v4, %v67_v2  ;;  %v86_v13 = vld [vmem:[#allocation5 + $0x98] sm:$0xff] }
  0x39   :  { %v820_v8 = vpack.c.bf16 %v116_v6, %v115_v5  ;;  %v99_v9 = vld [vmem:[#allocation5 + $0x100] sm:$0xff]  ;;  %v100_v10 = vld [vmem:[#allocation5 + $0x108] sm:$0xff]  ;;  %789 = vmatprep.subr.bf16.mxu0 %v788_v3  ;;  %v69_v14 = vld [vmem:[#allocation5 + $0x10] sm:$0xff]  ;;  %v792_v16 = vpack.c.bf16 %v86_v13, %v85_v11 }
  0x3a   :  { %v822_v12 = vpack.c.bf16 %v100_v10, %v99_v9  ;;  %v70_v15 = vld [vmem:[#allocation5 + $0x18] sm:$0xff]  ;;  %791 = vmatpush3.bf16.msra.mxu0 %v790_v7  ;;  %v117_v18 = vld [vmem:[#allocation5 + $0x190] sm:$0xff]  ;;  %v87_v23 = vld [vmem:[#allocation5 + $0xa0] sm:$0xff] }
  0x3b   :  { %821 = vmatprep.subr.bf16.mxu1 %v820_v8  ;;  %v794_v17 = vpack.c.bf16 %v70_v15, %v69_v14  ;;  %v118_v19 = vld [vmem:[#allocation5 + $0x198] sm:$0xff]  ;;  %v101_v20 = vld [vmem:[#allocation5 + $0x110] sm:$0xff]  ;;  %v88_v24 = vld [vmem:[#allocation5 + $0xa8] sm:$0xff]  ;;  %793 = vmatprep.subr.bf16.mxu0 %v792_v16 }
  0x3c   :  { %823 = vmatpush3.bf16.msra.mxu1 %v822_v12  ;;  %v824_v21 = vpack.c.bf16 %v118_v19, %v117_v18  ;;  %v102_v22 = vld [vmem:[#allocation5 + $0x118] sm:$0xff]  ;;  %v796_v26 = vpack.c.bf16 %v88_v24, %v87_v23  ;;  %v71_v27 = vld [vmem:[#allocation5 + $0x20] sm:$0xff]  ;;  %v72_v28 = vld [vmem:[#allocation5 + $0x28] sm:$0xff] }
  0x3d   :  { %v826_v25 = vpack.c.bf16 %v102_v22, %v101_v20  ;;  %v119_v29 = vld [vmem:[#allocation5 + $0x1a0] sm:$0xff]  ;;  %v120_v30 = vld [vmem:[#allocation5 + $0x1a8] sm:$0xff]  ;;  %v798_v33 = vpack.c.bf16 %v72_v28, %v71_v27  ;;  %v89_v35 = vld [vmem:[#allocation5 + $0xb0] sm:$0xff] }
  0x3e   :  { %825 = vmatprep.subr.bf16.mxu1 %v824_v21  ;;  %v103_v31 = vld [vmem:[#allocation5 + $0x120] sm:$0xff]  ;;  %v104_v32 = vld [vmem:[#allocation5 + $0x128] sm:$0xff]  ;;  %795 = vmatpush3.bf16.msra.mxu0 %v794_v17  ;;  %v828_v34 = vpack.c.bf16 %v120_v30, %v119_v29  ;;  %v90_v36 = vld [vmem:[#allocation5 + $0xb8] sm:$0xff] }
  0x3f   :  { %v73_v37 = vld [vmem:[#allocation5 + $0x30] sm:$0xff]  ;;  %797 = vmatprep.subr.bf16.mxu0 %v796_v26  ;;  %v830_v38 = vpack.c.bf16 %v104_v32, %v103_v31  ;;  %v800_v39 = vpack.c.bf16 %v90_v36, %v89_v35  ;;  %v74_v40 = vld [vmem:[#allocation5 + $0x38] sm:$0xff]  ;;  %v91_v46 = vld [vmem:[#allocation5 + $0xc0] sm:$0xff] }
  0x40   :  { %827 = vmatpush3.bf16.msra.mxu1 %v826_v25  ;;  %v121_v41 = vld [vmem:[#allocation5 + $0x1b0] sm:$0xff]  ;;  %v122_v42 = vld [vmem:[#allocation5 + $0x1b8] sm:$0xff]  ;;  %v92_v47 = vld [vmem:[#allocation5 + $0xc8] sm:$0xff]  ;;  %v802_v48 = vpack.c.bf16 %v74_v40, %v73_v37 }
  0x41   :  { %829 = vmatprep.subr.bf16.mxu1 %v828_v34  ;;  %v832_v43 = vpack.c.bf16 %v122_v42, %v121_v41  ;;  %v105_v44 = vld [vmem:[#allocation5 + $0x130] sm:$0xff]  ;;  %v106_v45 = vld [vmem:[#allocation5 + $0x138] sm:$0xff]  ;;  %v123_v49 = vld [vmem:[#allocation5 + $0x1c0] sm:$0xff]  ;;  %v804_v52 = vpack.c.bf16 %v92_v47, %v91_v46 }
  0x42   :  { %799 = vmatpush3.bf16.msra.mxu0 %v798_v33  ;;  %v124_v50 = vld [vmem:[#allocation5 + $0x1c8] sm:$0xff]  ;;  %v834_v51 = vpack.c.bf16 %v106_v45, %v105_v44  ;;  %v75_v53 = vld [vmem:[#allocation5 + $0x40] sm:$0xff]  ;;  %v93_v58 = vld [vmem:[#allocation5 + $0xd0] sm:$0xff] }
  0x43   :  { %801 = vmatprep.subr.bf16.mxu0 %v800_v39  ;;  %v76_v54 = vld [vmem:[#allocation5 + $0x48] sm:$0xff]  ;;  %v107_v55 = vld [vmem:[#allocation5 + $0x140] sm:$0xff]  ;;  %v836_v56 = vpack.c.bf16 %v124_v50, %v123_v49  ;;  %v94_v59 = vld [vmem:[#allocation5 + $0xd8] sm:$0xff] }
  0x44   :  { %831 = vmatpush3.bf16.msra.mxu1 %v830_v38  ;;  %v108_v57 = vld [vmem:[#allocation5 + $0x148] sm:$0xff]  ;;  %v125_v60 = vld [vmem:[#allocation5 + $0x1d0] sm:$0xff]  ;;  %v126_v61 = vld [vmem:[#allocation5 + $0x1d8] sm:$0xff]  ;;  %v806_v62 = vpack.c.bf16 %v76_v54, %v75_v53  ;;  %v808_v0 = vpack.c.bf16 %v94_v59, %v93_v58 }
  0x45   :  { %833 = vmatprep.subr.bf16.mxu1 %v832_v43  ;;  %v838_v63 = vpack.c.bf16 %v108_v57, %v107_v55  ;;  %v77_v1 = vld [vmem:[#allocation5 + $0x50] sm:$0xff]  ;;  %v78_v2 = vld [vmem:[#allocation5 + $0x58] sm:$0xff]  ;;  %v840_v4 = vpack.c.bf16 %v126_v61, %v125_v60  ;;  %v95_v6 = vld [vmem:[#allocation5 + $0xe0] sm:$0xff] }
  0x46   :  { %803 = vmatpush3.bf16.msra.mxu0 %v802_v48  ;;  %v109_v3 = vld [vmem:[#allocation5 + $0x150] sm:$0xff]  ;;  %v110_v5 = vld [vmem:[#allocation5 + $0x158] sm:$0xff]  ;;  %v96_v7 = vld [vmem:[#allocation5 + $0xe8] sm:$0xff]  ;;  %v810_v10 = vpack.c.bf16 %v78_v2, %v77_v1  ;;  %v1042_v1 = vmov 0.0  }
  0x47   :  { %805 = vmatprep.subr.bf16.mxu0 %v804_v52  ;;  %v127_v8 = vld [vmem:[#allocation5 + $0x1e0] sm:$0xff]  ;;  %v128_v9 = vld [vmem:[#allocation5 + $0x1e8] sm:$0xff]  ;;  %v61_v12 = vld [vmem:[#allocation2 + $0x8] sm:$0xff]  ;;  %v842_v13 = vpack.c.bf16 %v110_v5, %v109_v3  ;;  %v812_v14 = vpack.c.bf16 %v96_v7, %v95_v6 }
  0x48   :  { %835 = vmatpush3.bf16.msra.mxu1 %v834_v51  ;;  %v79_v11 = vld [vmem:[#allocation5 + $0x60] sm:$0xff]  ;;  %v80_v15 = vld [vmem:[#allocation5 + $0x68] sm:$0xff]  ;;  %v844_v18 = vpack.c.bf16 %v128_v9, %v127_v8  ;;  %v97_v19 = vld [vmem:[#allocation5 + $0xf0] sm:$0xff]  ;;  %250 = vmatprep.mubr.f32.mxu0 %v61_v12  ;;  %v1040_v51 = vmov 0.0|0.0  }
  0x49   :  { %837 = vmatprep.subr.bf16.mxu1 %v836_v56  ;;  %v111_v16 = vld [vmem:[#allocation5 + $0x160] sm:$0xff]  ;;  %v112_v17 = vld [vmem:[#allocation5 + $0x168] sm:$0xff]  ;;  %v98_v20 = vld [vmem:[#allocation5 + $0xf8] sm:$0xff]  ;;  %v814_v24 = vpack.c.bf16 %v80_v15, %v79_v11 }
  0x4a   :  { %807 = vmatpush3.bf16.msra.mxu0 %v806_v62  ;;  %v63_v21 = vld [vmem:[#allocation2 + $0x18] sm:$0xff]  ;;  %v129_v22 = vld [vmem:[#allocation5 + $0x1f0] sm:$0xff]  ;;  %v130_v23 = vld [vmem:[#allocation5 + $0x1f8] sm:$0xff]  ;;  %v846_v25 = vpack.c.bf16 %v112_v17, %v111_v16  ;;  %v816_v26 = vpack.c.bf16 %v98_v20, %v97_v19 }
  0x4b   :  { %809 = vmatprep.subr.bf16.mxu0 %v808_v0  ;;  %320 = vmatprep.mubr.f32.mxu1 %v63_v21  ;;  %v81_v27 = vld [vmem:[#allocation5 + $0x70] sm:$0xff]  ;;  %v82_v28 = vld [vmem:[#allocation5 + $0x78] sm:$0xff]  ;;  %v848_v30 = vpack.c.bf16 %v130_v23, %v129_v22  ;;  %v147_v32 = vld [vmem:[#allocation5 + $0x280] sm:$0xff] }
  0x4c   :  { %839 = vmatpush3.bf16.msra.mxu1 %v838_v63  ;;  %v113_v29 = vld [vmem:[#allocation5 + $0x170] sm:$0xff]  ;;  %v114_v31 = vld [vmem:[#allocation5 + $0x178] sm:$0xff]  ;;  %v148_v33 = vld [vmem:[#allocation5 + $0x288] sm:$0xff]  ;;  %v818_v34 = vpack.c.bf16 %v82_v28, %v81_v27 }
  0x4d   :  { %841 = vmatprep.subr.bf16.mxu1 %v840_v4  ;;  %v850_v35 = vpack.c.bf16 %v114_v31, %v113_v29  ;;  %v852_v36 = vpack.c.bf16 %v148_v33, %v147_v32  ;;  %v131_v37 = vld [vmem:[#allocation5 + $0x200] sm:$0xff]  ;;  %v132_v38 = vld [vmem:[#allocation5 + $0x208] sm:$0xff]  ;;  %v149_v39 = vld [vmem:[#allocation5 + $0x290] sm:$0xff] }
  0x4e   :  { %811 = vmatpush3.bf16.msra.mxu0 %v810_v10  ;;  %v150_v40 = vld [vmem:[#allocation5 + $0x298] sm:$0xff]  ;;  %v163_v41 = vld [vmem:[#allocation5 + $0x300] sm:$0xff]  ;;  %v164_v42 = vld [vmem:[#allocation5 + $0x308] sm:$0xff]  ;;  %v854_v44 = vpack.c.bf16 %v132_v38, %v131_v37 }
  0x4f   :  { %813 = vmatprep.subr.bf16.mxu0 %v812_v14  ;;  %v60_v43 = vld [vmem:[#allocation2] sm:$0xff]  ;;  %v62_v45 = vld [vmem:[#allocation2 + $0x10] sm:$0xff]  ;;  %v856_v46 = vpack.c.bf16 %v150_v40, %v149_v39  ;;  %v133_v47 = vld [vmem:[#allocation5 + $0x210] sm:$0xff]  ;;  %v885_v49 = vpack.c.bf16 %v164_v42, %v163_v41 }
  0x50   :  { %843 = vmatpush3.bf16.msra.mxu1 %v842_v13  ;;  %v134_v48 = vld [vmem:[#allocation5 + $0x218] sm:$0xff]  ;;  %v151_v50 = vld [vmem:[#allocation5 + $0x2a0] sm:$0xff]  ;;  %v152_v52 = vld [vmem:[#allocation5 + $0x2a8] sm:$0xff] }
  0x51   :  { %845 = vmatprep.subr.bf16.mxu1 %v844_v18  ;;  %v165_v53 = vld [vmem:[#allocation5 + $0x310] sm:$0xff]  ;;  %v166_v54 = vld [vmem:[#allocation5 + $0x318] sm:$0xff]  ;;  %v858_v55 = vpack.c.bf16 %v134_v48, %v133_v47  ;;  %v135_v56 = vld [vmem:[#allocation5 + $0x220] sm:$0xff]  ;;  %v860_v57 = vpack.c.bf16 %v152_v52, %v151_v50 }
  0x52   :  { %815 = vmatpush3.bf16.msra.mxu0 %v814_v24  ;;  %v136_v58 = vld [vmem:[#allocation5 + $0x228] sm:$0xff]  ;;  %v888_v59 = vpack.c.bf16 %v166_v54, %v165_v53  ;;  %v153_v60 = vld [vmem:[#allocation5 + $0x2b0] sm:$0xff]  ;;  %v154_v61 = vld [vmem:[#allocation5 + $0x2b8] sm:$0xff] }
  0x53   :  { %817 = vmatprep.subr.bf16.mxu0 %v816_v26  ;;  %v167_v62 = vld [vmem:[#allocation5 + $0x320] sm:$0xff]  ;;  %v168_v63 = vld [vmem:[#allocation5 + $0x328] sm:$0xff]  ;;  %v65_v0 = vld [vmem:[#allocation2 + $0x28] sm:$0xff]  ;;  %v862_v2 = vpack.c.bf16 %v136_v58, %v135_v56  ;;  %v864_v3 = vpack.c.bf16 %v154_v61, %v153_v60 }
  0x54   :  { %847 = vmatpush3.bf16.msra.mxu1 %v846_v25  ;;  %v137_v4 = vld [vmem:[#allocation5 + $0x230] sm:$0xff]  ;;  %v138_v5 = vld [vmem:[#allocation5 + $0x238] sm:$0xff]  ;;  %v891_v6 = vpack.c.bf16 %v168_v63, %v167_v62  ;;  %v155_v7 = vld [vmem:[#allocation5 + $0x2c0] sm:$0xff] }
  0x55   :  { %849 = vmatprep.subr.bf16.mxu1 %v848_v30  ;;  %v156_v8 = vld [vmem:[#allocation5 + $0x2c8] sm:$0xff]  ;;  %v169_v9 = vld [vmem:[#allocation5 + $0x330] sm:$0xff]  ;;  %v170_v10 = vld [vmem:[#allocation5 + $0x338] sm:$0xff]  ;;  %v866_v11 = vpack.c.bf16 %v138_v5, %v137_v4 }
  0x56   :  { %819 = vmatpush3.bf16.msra.mxu0 %v818_v34  ;;  %v868_v12 = vpack.c.bf16 %v156_v8, %v155_v7  ;;  %v139_v13 = vld [vmem:[#allocation5 + $0x240] sm:$0xff]  ;;  %v140_v14 = vld [vmem:[#allocation5 + $0x248] sm:$0xff]  ;;  %v894_v15 = vpack.c.bf16 %v170_v10, %v169_v9  ;;  %v157_v16 = vld [vmem:[#allocation5 + $0x2d0] sm:$0xff] }
  0x57   :  { %853 = vmatprep.subr.bf16.mxu0 %v852_v36  ;;  %v158_v17 = vld [vmem:[#allocation5 + $0x2d8] sm:$0xff]  ;;  %v171_v18 = vld [vmem:[#allocation5 + $0x340] sm:$0xff]  ;;  %v172_v19 = vld [vmem:[#allocation5 + $0x348] sm:$0xff]  ;;  %v870_v20 = vpack.c.bf16 %v140_v14, %v139_v13 }
  0x58   :  { %851 = vmatpush3.bf16.msra.mxu1 %v850_v35  ;;  %v872_v21 = vpack.c.bf16 %v158_v17, %v157_v16  ;;  %v141_v22 = vld [vmem:[#allocation5 + $0x250] sm:$0xff]  ;;  %v142_v23 = vld [vmem:[#allocation5 + $0x258] sm:$0xff]  ;;  %v897_v24 = vpack.c.bf16 %v172_v19, %v171_v18  ;;  %v159_v25 = vld [vmem:[#allocation5 + $0x2e0] sm:$0xff] }
  0x59   :  { %884 = vmatprep.subr.bf16.mxu1 %v1040_v51  ;;  %251 = vmatmul.mubr.f32.vlgmr.msra.gmra.mrb[0].mxu0 %v60_v43  ;;  %v160_v26 = vld [vmem:[#allocation5 + $0x2e8] sm:$0xff]  ;;  %v173_v27 = vld [vmem:[#allocation5 + $0x350] sm:$0xff]  ;;  %v174_v28 = vld [vmem:[#allocation5 + $0x358] sm:$0xff]  ;;  %v874_v29 = vpack.c.bf16 %v142_v23, %v141_v22 }
  0x5a   :  { %855 = vmatpush3.bf16.msra.mxu0 %v854_v44  ;;  %390 = vmatprep.mubr.f32.mxu0 %v65_v0  ;;  %v876_v30 = vpack.c.bf16 %v160_v26, %v159_v25  ;;  %v143_v31 = vld [vmem:[#allocation5 + $0x260] sm:$0xff]  ;;  %v144_v32 = vld [vmem:[#allocation5 + $0x268] sm:$0xff]  ;;  %v900_v33 = vpack.c.bf16 %v174_v28, %v173_v27  ;;  %v161_v34 = vld [vmem:[#allocation5 + $0x2f0] sm:$0xff] }
  0x5b   :  { %321 = vmatmul.mubr.f32.vlgmr.msra.gmra.mrb[0].mxu1 %v62_v45  ;;  %857 = vmatprep.subr.bf16.mxu0 %v856_v46  ;;  %v162_v35 = vld [vmem:[#allocation5 + $0x2f8] sm:$0xff]  ;;  %v175_v36 = vld [vmem:[#allocation5 + $0x360] sm:$0xff]  ;;  %v176_v37 = vld [vmem:[#allocation5 + $0x368] sm:$0xff]  ;;  %v878_v38 = vpack.c.bf16 %v144_v32, %v143_v31 }
  0x5c   :  { %886 = vmatpush3.bf16.msra.mxu1 %v885_v49  ;;  %750 = vmatprep.mubr.msk.f32.mxu1 %vm1041_vm0, %v1042_v1  ;;  %v880_v39 = vpack.c.bf16 %v162_v35, %v161_v34  ;;  %v145_v40 = vld [vmem:[#allocation5 + $0x270] sm:$0xff]  ;;  %v146_v41 = vld [vmem:[#allocation5 + $0x278] sm:$0xff]  ;;  %v903_v42 = vpack.c.bf16 %v176_v37, %v175_v36  ;;  %v64_v47 = vld [vmem:[#allocation2 + $0x20] sm:$0xff] }
  0x5d   :  { %887 = vmatprep.subr.bf16.mxu1 %v1040_v51  ;;  %v177_v43 = vld [vmem:[#allocation5 + $0x370] sm:$0xff]  ;;  %v178_v44 = vld [vmem:[#allocation5 + $0x378] sm:$0xff]  ;;  %v882_v45 = vpack.c.bf16 %v146_v41, %v145_v40  ;;  %v467_v49 = vld [vmem:[#allocation7] sm:$0xff] }
  0x5e   :  { %859 = vmatpush3.bf16.msra.mxu0 %v858_v55  ;;  %v906_v46 = vpack.c.bf16 %v178_v44, %v177_v43  ;;  %v66_v48 = vld [vmem:[#allocation2 + $0x30] sm:$0xff]  ;;  %v468_v50 = vld [vmem:[#allocation7 + $0x8] sm:$0xff]  ;;  %v469_v52 = vld [vmem:[#allocation7 + $0x10] sm:$0xff] }
  0x5f   :  { %861 = vmatprep.subr.bf16.mxu0 %v860_v57  ;;  %v909_v53 = vpack.c.bf16 %v468_v50, %v467_v49  ;;  %v470_v54 = vld [vmem:[#allocation7 + $0x18] sm:$0xff]  ;;  %v471_v56 = vld [vmem:[#allocation7 + $0x20] sm:$0xff]  ;;  %v472_v57 = vld [vmem:[#allocation7 + $0x28] sm:$0xff] }
  0x60   :  { %889 = vmatpush3.bf16.msra.mxu1 %v888_v59  ;;  %v912_v55 = vpack.c.bf16 %v470_v54, %v469_v52  ;;  %v915_v58 = vpack.c.bf16 %v472_v57, %v471_v56  ;;  %v473_v59 = vld [vmem:[#allocation7 + $0x30] sm:$0xff]  ;;  %v474_v60 = vld [vmem:[#allocation7 + $0x38] sm:$0xff]  ;;  %v475_v62 = vld [vmem:[#allocation7 + $0x40] sm:$0xff] }
  0x61   :  { %890 = vmatprep.subr.bf16.mxu1 %v1040_v51  ;;  %v918_v61 = vpack.c.bf16 %v474_v60, %v473_v59  ;;  %v476_v63 = vld [vmem:[#allocation7 + $0x48] sm:$0xff]  ;;  %v479_v4 = vld [vmem:[#allocation7 + $0x60] sm:$0xff]  ;;  %v481_v7 = vld [vmem:[#allocation7 + $0x70] sm:$0xff] }
  0x62   :  { %863 = vmatpush3.bf16.msra.mxu0 %v862_v2  ;;  %v921_v0 = vpack.c.bf16 %v476_v63, %v475_v62  ;;  %v478_v2 = vld [vmem:[#allocation7 + $0x58] sm:$0xff]  ;;  %v480_v5 = vld [vmem:[#allocation7 + $0x68] sm:$0xff] }
  0x63   :  { %865 = vmatprep.subr.bf16.mxu0 %v864_v3  ;;  %v482_v8 = vld [vmem:[#allocation7 + $0x78] sm:$0xff]  ;;  %v578_v26 = vld [vmem:[%s1158_s4] ss:$0 sm:$0xff] }
  0x64   :  { %892 = vmatpush3.bf16.msra.mxu1 %v891_v6  ;;  %v927_v6 = vpack.c.bf16 %v480_v5, %v479_v4  ;;  %v930_v9 = vpack.c.bf16 %v482_v8, %v481_v7 }
  0x65   :  { %893 = vmatprep.subr.bf16.mxu1 %v1040_v51 }
  0x66   :  { %867 = vmatpush3.bf16.msra.mxu0 %v866_v11  ;;  %v577_v11 = vld [vmem:[%s1156_s2] ss:$0 sm:$0xff]  ;;  %s1043_s2 = smov [#allocation8]  }
  0x67   :  { %869 = vmatprep.subr.bf16.mxu0 %v868_v12  ;;  %s567_s7 = sshll.u32 %s1043_s2, 4  ;;  %s568_s7 = int_to_ptr.vmem [resolvable:$true] %s567_s7 }
  0x68   :  { %895 = vmatpush3.bf16.msra.mxu1 %v894_v15  ;;  %s1007_s8 = scalar_lea.vmem %s568_s7, 128  ;;  %p1012_p11 = scmp.lt.s32.totalorder %s568_s7, %s568_s7 }
  0x69   :  { %896 = vmatprep.subr.bf16.mxu1 %v1040_v51  ;;  %p1008_p10 = scmp.ne.s32.totalorder %s568_s7, %s1007_s8  ;;  %p1013_p12 = scmp.lt.s32.totalorder %s1007_s8, %s1007_s8 }
  0x6a   :  { %871 = vmatpush3.bf16.msra.mxu0 %v870_v20 }
  0x6b   :  { %873 = vmatprep.subr.bf16.mxu0 %v872_v21  ;;  %p1014_p13 = por %p1013_p12, %p1012_p11 }
  0x6c   :  { %898 = vmatpush3.bf16.msra.mxu1 %v897_v24 }
  0x6d   :  { %899 = vmatprep.subr.bf16.mxu1 %v1040_v51  ;;  %p1015_p0 = pnand %p1014_p13, %p1008_p10 }
  0x6e   :  { %875 = vmatpush3.bf16.msra.mxu0 %v874_v29 }
  0x6f   :  { %877 = vmatprep.subr.bf16.mxu0 %v876_v30 }
  0x70   :  { %901 = vmatpush3.bf16.msra.mxu1 %v900_v33 }
  0x71   :  { %902 = vmatprep.subr.bf16.mxu1 %v1040_v51 }
  0x72   :  { %879 = vmatpush3.bf16.msra.mxu0 %v878_v38 }
  0x73   :  { %881 = vmatprep.subr.bf16.mxu0 %v880_v39 }
  0x74   :  { %904 = vmatpush3.bf16.msra.mxu1 %v903_v42 }
  0x75   :  { %905 = vmatprep.subr.bf16.mxu1 %v1040_v51 }
  0x76   :  { %883 = vmatpush3.bf16.msra.mxu0 %v882_v45 }
  0x77   :  { %908 = vmatprep.subr.bf16.mxu0 %v1040_v51 }
  0x78   :  { %907 = vmatpush3.bf16.msra.mxu1 %v906_v46 }
  0x79   :  { %391 = vmatmul.mubr.f32.vlgmr.msra.gmra.mrb[2].mxu0 %v64_v47 }
  0x7a   :  { %785 = vmatprep.mubr.msk.f32.mxu0 %vm1041_vm0, %v1042_v1  ;;  %910 = vmatpush3.bf16.msra.mxu0 %v909_v53  ;;  %v477_v1 = vld [vmem:[#allocation7 + $0x50] sm:$0xff] }
  0x7b   :  { %751 = vmatmul.mubr.f32.vlgmr.msra.gmra.mrb[2].mxu1 %v66_v48  ;;  %911 = vmatprep.subr.bf16.mxu0 %v1040_v51  ;;  %v924_v3 = vpack.c.bf16 %v478_v2, %v477_v1 }
  0x7e   :  { %913 = vmatpush3.bf16.msra.mxu0 %v912_v55 }
  0x7f   :  { %914 = vmatprep.subr.bf16.mxu0 %v1040_v51 }
  0x82   :  { %916 = vmatpush3.bf16.msra.mxu0 %v915_v58 }
  0x83   :  { %917 = vmatprep.subr.bf16.mxu0 %v1040_v51 }
  0x86   :  { %919 = vmatpush3.bf16.msra.mxu0 %v918_v61 }
  0x87   :  { %920 = vmatprep.subr.bf16.mxu0 %v1040_v51 }
  0x8a   :  { %922 = vmatpush3.bf16.msra.mxu0 %v921_v0 }
  0x8b   :  { %923 = vmatprep.subr.bf16.mxu0 %v1040_v51 }
  0x8e   :  { %925 = vmatpush3.bf16.msra.mxu0 %v924_v3 }
  0x8f   :  { %926 = vmatprep.subr.bf16.mxu0 %v1040_v51 }
  0x92   :  { %928 = vmatpush3.bf16.msra.mxu0 %v927_v6 }
  0x93   :  { %929 = vmatprep.subr.bf16.mxu0 %v1040_v51 }
  0x96   :  { %931 = vmatpush3.bf16.msra.mxu0 %v930_v9 }
 0x12c   :  { %v611_v10 = vpop.f32.mrb[0].mxu0 }
 0x12d   :  { %v612_v12 = vpop.f32.mrb[1].mxu0 }
 0x12e   :  { %v646_v13 = vpop.f32.mrb[0].mxu1  ;;  %v613_v14 = vadd.f32 %v612_v12, %v611_v10 }
 0x12f   :  { %v647_v15 = vpop.f32.mrb[1].mxu1 }
 0x130   :  { %v648_v16 = vadd.f32 %v647_v15, %v646_v13  ;;  %v253_v17 = vadd.f32 %v613_v14, %v577_v11 }
 0x132   :  { %v323_v18 = vadd.f32 %v648_v16, %v253_v17 }
 0x14c   :  { %v681_v19 = vpop.f32.mrb[2].mxu0 }
 0x14d   :  { %v682_v20 = vpop.f32.mrb[3].mxu0 }
 0x14e   :  { %v462_v21 = vpop.f32.mrb[2].mxu1  ;;  %v683_v51 = vadd.f32 %v682_v20, %v681_v19 }
 0x14f   :  { %v752_v22 = vpop.f32.mrb[3].mxu1 }
 0x150   :  { %v393_v23 = vadd.f32 %v683_v51, %v323_v18 }
 0x152   :  { %v463_v24 = vadd.f32 %v462_v21, %v393_v23 }
 0x154   :  { %v466_v25 = vmax.f32 %v463_v24, 0.0 }
 0x156   :  { %786 = vmatmul.mubr.f32.vlgmr.msra.gmra.mrb[4].mxu0 %v466_v25 }
 0x229   :  { %v556_v27 = vpop.f32.mrb[4].mxu0 }
 0x22a   :  { %v557_v28 = vadd.f32 %v578_v26, %v556_v27  ;;  %v787_v29 = vpop.f32.mrb[5].mxu0 }
 0x22c   :  { %560 = vst [vmem:[#allocation8] sm:$0xff] %v557_v28 }
 0x22d   :  { %1018 = shalt.err (!%p1015_p0)
}
 0x22e   :  { %s1019_s11 = scalar_lea.hbm %s1159_s5, 128 }
 0x22f   :  { %p1020_p1 = scmp.ne.s32.totalorder %s1159_s5, %s1019_s11  ;;  %p1023_p2 = scmp.lt.u32.totalorder %s1019_s11, %s1159_s5 }
 0x231   :  { %p1025_p3 = pnand %p1023_p2, %p1020_p1 }
 0x233   :  { %1028 = shalt.err (!%p1025_p3)
}
 0x234   :  { %570 = dma.vmem_to_hbm [thread:$0]  %s568_s7, 128, %s1159_s5, [#allocation4]  }
 0x235   :  { %1033 = dma.done.wait [#allocation4], 128  }
 0x236   :  { %1034 = vsyncadd [#allocation4], 4294967168 }
 0x237   :  { %574 = vsyncpa [#allocation3], 1 }
 0x238   :  { %575 = vsyncpa [#allocation6], 1 }
 0x239   :  { %576 = vsyncpa [#allocation4], 1 }

</bundles_post_ra>
